<compile_context>
chip_gen: v6e
topology: v6e:2x2x1
jax: 0.10.0
libtpu: 0.0.40
codegen_flags: <defaults>
</compile_context>

<pallas_src>
import functools

import jax
import jax.numpy as jnp
from jax import lax
from jax.experimental import pallas as pl
from jax.experimental.pallas import tpu as pltpu


# ---------------------------------------------------------------------------
# Kernel
# ---------------------------------------------------------------------------
def _sumsq_kernel(pred_ref, tgt_ref, acc_ref, *, block_rows, steps, n_rows,
                  needs_mask):
    """Accumulate per-lane sum((pred - tgt)^2) for one (block_rows, lanes) tile.

    acc_ref: (1, 1, lanes) per-chunk partial-sum accumulator, resident across
             the trailing ("arbitrary") reduction axis of the grid.
    """
    c = pl.program_id(0)  # parallel chunk (TensorCore shard on multi-TC chips)
    s = pl.program_id(1)  # reduction step within the chunk

    @pl.when(s == 0)
    def _init():
        acc_ref[...] = jnp.zeros_like(acc_ref)

    p = pred_ref[...].astype(jnp.float32)
    g = tgt_ref[...].astype(jnp.float32)
    diff = p - g
    sq = diff * diff

    if needs_mask:
        start = (c * steps + s) * block_rows
        is_partial = start + block_rows > n_rows  # only the global last block

        @pl.when(jnp.logical_not(is_partial))
        def _interior():  # unmasked fast path for interior blocks
            acc_ref[...] += jnp.sum(sq, axis=0, keepdims=True)[None]

        @pl.when(is_partial)
        def _boundary():  # mask padded tail rows of the single partial block
            row_ids = start + lax.broadcasted_iota(jnp.int32, sq.shape, 0)
            masked = jnp.where(row_ids < n_rows, sq, 0.0)
            acc_ref[...] += jnp.sum(masked, axis=0, keepdims=True)[None]
    else:
        acc_ref[...] += jnp.sum(sq, axis=0, keepdims=True)[None]


# ---------------------------------------------------------------------------
# Helpers
# ---------------------------------------------------------------------------
def _device_kind():
    try:
        return jax.devices()[0].device_kind.lower()
    except Exception:
        return ""


def _is_single_tensorcore(kind):
    # v5e / v6e ("lite" family) and v2/v3 present one TensorCore per device;
    # v4 / v5p (megacore) and v7x shard "parallel" grid axes across 2 TCs.
    return any(t in kind for t in ("lite", "v5e", "v6e", "v2", "v3"))


def _joints_mse_loss_jnp(output, target, loss_weight=1.0):
    """Fused pure-JAX path (small tensors / non-128-divisible totals)."""
    B, J, H, W = output.shape
    p = output.reshape(B, J, H * W).astype(jnp.float32)
    g = target.reshape(B, J, H * W).astype(jnp.float32)
    per_joint = jnp.mean((p - g) ** 2, axis=(0, 2))
    return jnp.sum(per_joint) / J * loss_weight


# ---------------------------------------------------------------------------
# Wrapper
# ---------------------------------------------------------------------------
def joints_mse_loss(output, target, target_weight=None,
                    use_target_weight=False, loss_weight=1.0,
                    block_bytes=None, num_chunks=None,
                    jnp_fallback_bytes=2 * 1024 * 1024):
    """Pallas implementation of JointsMSELoss.forward (use_target_weight=False)."""
    assert not use_target_weight, "use_target_weight path not implemented"
    # TODO(synk): the use_target_weight branch of the reference indexes
    # target_weight inconsistently ([:idx] vs [:, idx]) — buggy in source, so
    # only the default (False) path is implemented; resolve with model owner.

    B, J, H, W = output.shape
    total = B * J * H * W
    elem_bytes = jnp.dtype(output.dtype).itemsize

    # Small-tensor / ragged-total fast path: let XLA fuse the whole expression
    # (avoids pallas_call launch overhead and any padding copy).
    if (total % 128 != 0) or (total * elem_bytes <= jnp_fallback_bytes):
        return _joints_mse_loss_jnp(output, target, loss_weight)

    kind = _device_kind()
    if block_bytes is None:
        # v5e: 16 MiB scoped-VMEM default -> keep 2 MiB blocks (8 MiB buffers);
        # v6e/v7x/others: 32 MiB default -> 4 MiB blocks (16 MiB buffers).
        is_v5e = ("v5" in kind) and ("lite" in kind or "v5e" in kind)
        block_bytes = (2 if is_v5e else 4) * 1024 * 1024
    if num_chunks is None:
        num_chunks = 1 if _is_single_tensorcore(kind) else 2

    # Lane-dense 2-D view of the flattened tensors (free reshape, no transpose,
    # no padding copy).
    lanes = 512 if total % 512 == 0 else (256 if total % 256 == 0 else 128)
    rows = total // lanes
    pred2d = output.reshape(rows, lanes)
    tgt2d = target.reshape(rows, lanes)

    # Native sublane packing: 8 rows (f32), 16 (bf16), 32 (int8/fp8).
    sublane = max(8, 32 // elem_bytes)
    row_bytes = lanes * elem_bytes
    max_block_rows = max(sublane, (block_bytes // row_bytes) // sublane * sublane)

    if rows <= max_block_rows:
        # Everything fits in one block; full-array block dims need no alignment.
        n_chunks, steps, block_rows = 1, 1, rows
        needs_mask = False
    else:
        n_chunks = max(1, int(num_chunks))
        block_rows = max_block_rows
        n_blocks = pl.cdiv(rows, block_rows)
        if n_chunks > 1:
            if n_blocks < n_chunks:
                n_chunks = 1
            else:
                # Balance the chunks by construction (no clamped / duplicated
                # blocks): shrink block_rows in sublane steps until the block
                # count divides evenly across chunks.
                found = False
                min_br = max(sublane, (max_block_rows // 4) // sublane * sublane)
                br = max_block_rows
                while br >= min_br:
                    nb = pl.cdiv(rows, br)
                    if nb % n_chunks == 0:
                        block_rows, n_blocks, found = br, nb, True
                        break
                    br -= sublane
                if not found:
                    n_chunks = 1  # rare; sequential path is still fine
        steps = n_blocks // n_chunks
        needs_mask = (rows % block_rows) != 0

    def in_map(c, s):
        return (c * steps + s, 0)

    kernel = functools.partial(
        _sumsq_kernel, block_rows=block_rows, steps=steps, n_rows=rows,
        needs_mask=needs_mask)

    # 2 inputs x 2 pipeline buffers; set the scoped-VMEM limit explicitly only
    # when the buffers would crowd the smallest (16 MiB) default.
    pipeline_bytes = 2 * 2 * block_rows * lanes * elem_bytes
    vmem_limit = 32 * 1024 * 1024 if pipeline_bytes > 12 * 1024 * 1024 else None

    partials = pl.pallas_call(
        kernel,
        out_shape=jax.ShapeDtypeStruct((n_chunks, 1, lanes), jnp.float32),
        grid_spec=pltpu.PrefetchScalarGridSpec(
            num_scalar_prefetch=0,
            grid=(n_chunks, steps),
            in_specs=[
                pl.BlockSpec((block_rows, lanes), in_map),
                pl.BlockSpec((block_rows, lanes), in_map),
            ],
            out_specs=pl.BlockSpec((1, 1, lanes), lambda c, s: (c, 0, 0)),
        ),
        compiler_params=pltpu.CompilerParams(
            dimension_semantics=("parallel", "arbitrary"),
            vmem_limit_bytes=vmem_limit),
    )(pred2d, tgt2d)

    # sum_j mean_{B,HW}(diff^2) / J  ==  sum(diff^2) / (B*J*H*W)
    return jnp.sum(partials) / total * loss_weight


def joints_mse_loss_ref(output, target, loss_weight=1.0):
    """Pure-JAX reference mirroring the PyTorch per-joint loop."""
    return _joints_mse_loss_jnp(output, target, loss_weight)


# ---------------------------------------------------------------------------
# Self-test
# ---------------------------------------------------------------------------
if __name__ == "__main__":
    key = jax.random.PRNGKey(0)
    k1, k2 = jax.random.split(key)

    # 1) Small f32 (B,J,H,W)=(2,4,16,16): force the Pallas path (single block).
    B, J, H, W = 2, 4, 16, 16
    o1 = jax.random.normal(k1, (B, J, H, W), dtype=jnp.float32)
    t1 = jax.random.normal(k2, (B, J, H, W), dtype=jnp.float32)
    l1 = jax.block_until_ready(joints_mse_loss(o1, t1, jnp_fallback_bytes=0))
    r1 = joints_mse_loss_ref(o1, t1)
    assert jnp.allclose(l1, r1, rtol=1e-5, atol=1e-6), (l1, r1)

    # 2) bf16, multi-block with a masked partial tail (tiny block_bytes forces
    #    tiling: rows=40, block_rows=16 -> last block partial).
    o2 = jax.random.normal(k1, (2, 10, 32, 32), dtype=jnp.bfloat16)
    t2 = jax.random.normal(k2, (2, 10, 32, 32), dtype=jnp.bfloat16)
    l2 = jax.block_until_ready(joints_mse_loss(
        o2, t2, loss_weight=2.0, jnp_fallback_bytes=0, block_bytes=16 * 512 * 2))
    r2 = joints_mse_loss_ref(o2, t2, loss_weight=2.0)
    assert jnp.allclose(l2, r2, rtol=1e-4, atol=1e-5), (l2, r2)

    # 3) f32, forced 2-chunk "parallel" split: balanced blocks by construction
    #    (rows=44 -> block_rows=8, 6 blocks, 3 steps/chunk) + masked tail.
    o3 = jax.random.normal(k1, (2, 11, 32, 32), dtype=jnp.float32)
    t3 = jax.random.normal(k2, (2, 11, 32, 32), dtype=jnp.float32)
    l3 = jax.block_until_ready(joints_mse_loss(
        o3, t3, jnp_fallback_bytes=0, block_bytes=16 * 512 * 4, num_chunks=2))
    r3 = joints_mse_loss_ref(o3, t3)
    assert jnp.allclose(l3, r3, rtol=1e-5, atol=1e-6), (l3, r3)

    # 4) Non-128-divisible total -> fused pure-JAX fallback (no padding copy).
    o4 = jax.random.normal(k1, (2, 3, 15, 7), dtype=jnp.float32)
    t4 = jax.random.normal(k2, (2, 3, 15, 7), dtype=jnp.float32)
    l4 = jax.block_until_ready(joints_mse_loss(o4, t4))
    assert jnp.allclose(l4, jnp.mean((o4 - t4) ** 2), rtol=1e-5, atol=1e-6)

    print("KERNEL_OK")
</pallas_src>

<mosaic_0001>
module attributes {stable_mosaic.version = 11 : i64} {
  func.func @_sumsq_kernel(%arg0: i32, %arg1: i32, %arg2: memref<4x512xf32, #tpu.memory_space<vmem>>, %arg3: memref<4x512xf32, #tpu.memory_space<vmem>>, %arg4: memref<1x1x512xf32, #tpu.memory_space<vmem>>) attributes {dimension_semantics = [#tpu.dimension_semantics<parallel>, #tpu.dimension_semantics<arbitrary>], iteration_bounds = array<i64: 1, 1>, scalar_prefetch = 0 : i64, scratch_operands = 0 : i64, tpu.core_type = #tpu.core_type<tc>, window_params = [{transform_indices = @transform_0, window_bounds = array<i64: 4, 512>}, {transform_indices = @transform_1, window_bounds = array<i64: 4, 512>}, {transform_indices = @transform_2, window_bounds = array<i64: 1, 1, 512>}]} {
    %c0_i32 = arith.constant 0 : i32
    %0 = arith.cmpi eq, %arg1, %c0_i32 : i32
    %1 = arith.extui %0 : i1 to i32
    %c0_i32_0 = arith.constant 0 : i32
    %2 = arith.cmpi ne, %1, %c0_i32_0 : i32
    scf.if %2 {
      %cst_10 = arith.constant 0.000000e+00 : f32
      %13 = vector.broadcast %cst_10 : f32 to vector<1x1x512xf32>
      %c0_11 = arith.constant 0 : index
      %c0_12 = arith.constant 0 : index
      %c0_13 = arith.constant 0 : index
      %14 = vector.load %arg4[%c0_11, %c0_12, %c0_13] : memref<1x1x512xf32, #tpu.memory_space<vmem>>, vector<1x1x512xf32>
      tpu.vector_store %arg4[%c0_11, %c0_12, %c0_13], %13 {strides = array<i32>} : memref<1x1x512xf32, #tpu.memory_space<vmem>>, vector<1x1x512xf32>,
    } else {
    }
    %c0 = arith.constant 0 : index
    %c0_1 = arith.constant 0 : index
    %3 = vector.load %arg2[%c0, %c0_1] : memref<4x512xf32, #tpu.memory_space<vmem>>, vector<4x512xf32>
    %c0_2 = arith.constant 0 : index
    %c0_3 = arith.constant 0 : index
    %4 = vector.load %arg3[%c0_2, %c0_3] : memref<4x512xf32, #tpu.memory_space<vmem>>, vector<4x512xf32>
    %5 = arith.subf %3, %4 : vector<4x512xf32>
    %6 = arith.mulf %5, %5 : vector<4x512xf32>
    %c0_4 = arith.constant 0 : index
    %c0_5 = arith.constant 0 : index
    %c0_6 = arith.constant 0 : index
    %7 = vector.load %arg4[%c0_4, %c0_5, %c0_6] : memref<1x1x512xf32, #tpu.memory_space<vmem>>, vector<1x1x512xf32>
    %cst = arith.constant dense<0.000000e+00> : vector<512xf32>
    %8 = vector.multi_reduction <add>, %6, %cst [0] : vector<4x512xf32> to vector<512xf32>
    %9 = vector.shape_cast %8 : vector<512xf32> to vector<1x512xf32>
    %10 = vector.shape_cast %9 : vector<1x512xf32> to vector<1x1x512xf32>
    %11 = arith.addf %7, %10 : vector<1x1x512xf32>
    %c0_7 = arith.constant 0 : index
    %c0_8 = arith.constant 0 : index
    %c0_9 = arith.constant 0 : index
    %12 = vector.load %arg4[%c0_7, %c0_8, %c0_9] : memref<1x1x512xf32, #tpu.memory_space<vmem>>, vector<1x1x512xf32>
    tpu.vector_store %arg4[%c0_7, %c0_8, %c0_9], %11 {strides = array<i32>} : memref<1x1x512xf32, #tpu.memory_space<vmem>>, vector<1x1x512xf32>,
    return
  }
  func.func @transform_0(%arg0: i32, %arg1: i32) -> (i32, i32) {
    %c1_i32 = arith.constant 1 : i32
    %0 = arith.muli %arg0, %c1_i32 : i32
    %1 = arith.addi %0, %arg1 : i32
    %c0_i32 = arith.constant 0 : i32
    %c0_i32_0 = arith.constant 0 : i32
    return %1, %c0_i32 : i32, i32
  }
  func.func @transform_1(%arg0: i32, %arg1: i32) -> (i32, i32) {
    %c1_i32 = arith.constant 1 : i32
    %0 = arith.muli %arg0, %c1_i32 : i32
    %1 = arith.addi %0, %arg1 : i32
    %c0_i32 = arith.constant 0 : i32
    %c0_i32_0 = arith.constant 0 : i32
    return %1, %c0_i32 : i32, i32
  }
  func.func @transform_2(%arg0: i32, %arg1: i32) -> (i32, i32, i32) {
    %c0_i32 = arith.constant 0 : i32
    %c0_i32_0 = arith.constant 0 : i32
    %c0_i32_1 = arith.constant 0 : i32
    return %arg0, %c0_i32, %c0_i32_0 : i32, i32, i32
  }
}

</mosaic_0001>

<bundles_post_ra>
// kernel: tpu_custom_call.1
= control target key start
LH: loop header
LB: loop body
LE: loop exit
PB: predicated region body
PF: predicated region fallthrough
CT: control target
= control target key end

     0   :  { %7 = vsyncpa [#allocation3], 0  ;;  %s258_s0 = inlined_call_operand.hbm [shape: f32[4,512], index: 0, kind: input, shape index: {}]   ;;  %s259_s1 = inlined_call_operand.hbm [shape: f32[4,512], index: 1, kind: input, shape index: {}]   ;;  %s260_s2 = inlined_call_operand.hbm [shape: f32[1,1,512], index: 2, kind: output, shape index: {}]  }
   0x1   :  { %8 = vsyncpa [#allocation6], 0 }
   0x2   :  { %9 = vsyncpa [#allocation4], 0  ;;  %s221_s9 = smov [#allocation2]   ;;  %s222_s11 = smov [#allocation5]  }
   0x3   :  { %s20_s10 = sshll.u32 %s221_s9, 4  ;;  %s34_s12 = sshll.u32 %s222_s11, 4  ;;  %s21_s10 = int_to_ptr.vmem [resolvable:$true] %s20_s10  ;;  %s35_s12 = int_to_ptr.vmem [resolvable:$true] %s34_s12 }
   0x4   :  { %s163_s13 = scalar_lea.vmem %s21_s10, 256  ;;  %p168_p1 = scmp.lt.s32.totalorder %s21_s10, %s21_s10 }
   0x5   :  { %p164_p0 = scmp.ne.s32.totalorder %s21_s10, %s163_s13  ;;  %p169_p2 = scmp.lt.s32.totalorder %s163_s13, %s163_s13 }
   0x7   :  { %p170_p3 = por %p169_p2, %p168_p1 }
   0x9   :  { %p171_p4 = pnand %p170_p3, %p164_p0 }
   0xb   :  { %174 = shalt.err (!%p171_p4)
}
   0xc   :  { %23 = dma.hbm_to_vmem [thread:$0]  %s258_s0, 256, %s21_s10, [#allocation3]  }
   0xd   :  { %s183_s16 = scalar_lea.vmem %s35_s12, 256  ;;  %p188_p6 = scmp.lt.s32.totalorder %s35_s12, %s35_s12 }
   0xe   :  { %p184_p5 = scmp.ne.s32.totalorder %s35_s12, %s183_s16  ;;  %p189_p7 = scmp.lt.s32.totalorder %s183_s16, %s183_s16 }
  0x10   :  { %p190_p8 = por %p189_p7, %p188_p6 }
  0x12   :  { %p191_p9 = pnand %p190_p8, %p184_p5 }
  0x14   :  { %194 = shalt.err (!%p191_p9)
}
  0x15   :  { %37 = dma.hbm_to_vmem [thread:$0]  %s259_s1, 256, %s35_s12, [#allocation6]  }
  0x16   :  { %215 = dma.done.wait [#allocation3], 256  }
  0x17   :  { %216 = vsyncadd [#allocation3], 4294967040 }
  0x18   :  { %217 = dma.done.wait [#allocation6], 256  }
  0x19   :  { %218 = vsyncadd [#allocation6], 4294967040  ;;  %v50_v0 = vlaneseq  ;;  %v223_v2 = vmov 0.0   ;;  %v55_v3 = vld [vmem:[#allocation2] sm:$0xff]  ;;  %v56_v4 = vld [vmem:[#allocation2 + $0x8] sm:$0xff]  ;;  %vm70_vm1 = vcmask 1043456  }
  0x1a   :  { %v57_v5 = vld [vmem:[#allocation5] sm:$0xff]  ;;  %v58_v6 = vld [vmem:[#allocation5 + $0x8] sm:$0xff]  ;;  %v224_v25 = vmov 1966171168   ;;  %s225_s0 = smov [#allocation7]  }
  0x1b   :  { %vm247_vm0 = vcmp.lt.s32.totalorder %v50_v0, 512  ;;  %v59_v7 = vsub.f32 %v55_v3, %v57_v5  ;;  %v60_v8 = vsub.f32 %v56_v4, %v58_v6  ;;  %v106_v26 = vunpack.c.l.s4 %v224_v25  ;;  %s140_s1 = sshll.u32 %s225_s0, 4  ;;  %s141_s1 = int_to_ptr.vmem [resolvable:$true] %s140_s1 }
  0x1c   :  { %54 = vst.msk [vmem:[#allocation7] sm:$0xf] %vm247_vm0, %v223_v2  ;;  %v109_v36 = vshrl.u32 %v50_v0, 7  ;;  %s195_s19 = scalar_lea.vmem %s141_s1, 64  ;;  %p200_p11 = scmp.lt.s32.totalorder %s141_s1, %s141_s1 }
  0x1d   :  { %v61_v9 = vmul.f32 %v59_v7, %v59_v7  ;;  %v62_v10 = vmul.f32 %v60_v8, %v60_v8  ;;  %v107_v35 = vunpack.c.0.s8 %v106_v26  ;;  %p196_p10 = scmp.ne.s32.totalorder %s141_s1, %s195_s19  ;;  %p201_p12 = scmp.lt.s32.totalorder %s195_s19, %s195_s19 }
  0x1f   :  { %v66_v11 = vcombine.high %v61_v9, %v61_v9  ;;  %v71_v12 = vsel %vm70_vm1, %v61_v9, 0.0  ;;  %v67_v13 = vcombine.high %v62_v10, %v62_v10  ;;  %v85_v15 = vsel %vm70_vm1, %v62_v10, 0.0  ;;  %p202_p13 = por %p201_p12, %p200_p11 }
  0x20   :  { %v72_v14 = vrot.slane %v71_v12, 4  ;;  %v86_v17 = vrot.slane %v85_v15, 4  ;;  %v110_v44 = vsub.s32 %v107_v35, %v109_v36 }
  0x21   :  { %v78_v16 = vsel %vm70_vm1, %v66_v11, 0.0  ;;  %v92_v20 = vsel %vm70_vm1, %v67_v13, 0.0  ;;  %p203_p0 = pnand %p202_p13, %p196_p10 }
  0x22   :  { %v73_v18 = vadd.f32 %v72_v14, %v71_v12  ;;  %v79_v19 = vrot.slane %v78_v16, 4  ;;  %v87_v21 = vadd.f32 %v86_v17, %v85_v15  ;;  %v93_v22 = vrot.slane %v92_v20, 4 }
  0x23   :  { %v63_v51 = vld [vmem:[#allocation7] sm:$0xf] }
  0x24   :  { %v74_v23 = vrot.slane %v73_v18, 2  ;;  %v80_v24 = vadd.f32 %v79_v19, %v78_v16  ;;  %v88_v27 = vrot.slane %v87_v21, 2  ;;  %v94_v28 = vadd.f32 %v93_v22, %v92_v20 }
  0x26   :  { %v75_v29 = vadd.f32 %v74_v23, %v73_v18  ;;  %v81_v30 = vrot.slane %v80_v24, 2  ;;  %v89_v31 = vadd.f32 %v88_v27, %v87_v21  ;;  %v95_v32 = vrot.slane %v94_v28, 2 }
  0x28   :  { %v76_v33 = vrot.slane %v75_v29, 1  ;;  %v82_v34 = vadd.f32 %v81_v30, %v80_v24  ;;  %v90_v37 = vrot.slane %v89_v31, 1  ;;  %v96_v38 = vadd.f32 %v95_v32, %v94_v28 }
  0x2a   :  { %v77_v39 = vadd.f32 %v76_v33, %v75_v29  ;;  %v83_v40 = vrot.slane %v82_v34, 1  ;;  %v91_v41 = vadd.f32 %v90_v37, %v89_v31  ;;  %v97_v42 = vrot.slane %v96_v38, 1 }
  0x2c   :  { %v84_v43 = vadd.f32 %v83_v40, %v82_v34  ;;  %v98_v45 = vadd.f32 %v97_v42, %v96_v38 }
  0x2e   :  { %v103_v46 = vcombine.low %v77_v39, %v84_v43  ;;  %v104_v47 = vcombine.low %v91_v41, %v98_v45 }
  0x30   :  { %v111_v48 = vrot.slane %v103_v46, %v110_v44  ;;  %v118_v49 = vrot.slane %v104_v47, %v110_v44 }
  0x32   :  { %v119_v50 = vcombine.low %v111_v48, %v118_v49 }
  0x34   :  { %v126_v52 = vrot.slane %v119_v50, %v110_v44 }
  0x36   :  { %v128_v53 = vadd.f32 %v126_v52, %v63_v51 }
  0x38   :  { %133 = vst.msk [vmem:[#allocation7] sm:$0xf] %vm247_vm0, %v128_v53 }
  0x39   :  { %206 = shalt.err (!%p203_p0)
}
  0x3a   :  { %143 = dma.vmem_to_hbm [thread:$0]  %s141_s1, 64, %s260_s2, [#allocation4]  }
  0x3b   :  { %219 = dma.done.wait [#allocation4], 64  }
  0x3c   :  { %220 = vsyncadd [#allocation4], 4294967232 }
  0x3d   :  { %147 = vsyncpa [#allocation3], 1 }
  0x3e   :  { %148 = vsyncpa [#allocation6], 1 }
  0x3f   :  { %149 = vsyncpa [#allocation4], 1 }

</bundles_post_ra>
